<compile_context>
chip_gen: v7x
topology: tpu7x:2x2x1
jax: 0.10.0
libtpu: 0.0.40
codegen_flags: <defaults>
</compile_context>

<pallas_src>
import functools

import jax
import jax.numpy as jnp
from jax.experimental import pallas as pl
from jax.experimental.pallas import tpu as pltpu


def _tv_block_kernel(x_ref, mask_ref, h_ref, w_ref, *, hw, w, blk, nc):
    """One grid step: blk flattened planes -> accumulate (h_tv, w_tv)."""
    step = pl.program_id(0)

    @pl.when(step == 0)
    def _init():
        h_ref[...] = jnp.zeros_like(h_ref)
        w_ref[...] = jnp.zeros_like(w_ref)

    x_raw = x_ref[...]                                    # (blk, hw), in dtype
    # roll(x, hw - s, axis=1)[:, j] == x[:, (j + s) % hw]; the "down"
    # neighbour is +w in the flat plane, the "right" neighbour is +1.
    # Roll the packed raw dtype (halves XLU pushes for bf16), upcast after.
    x = x_raw.astype(jnp.float32)
    x_down = pltpu.roll(x_raw, hw - w, axis=1).astype(jnp.float32)
    x_right = pltpu.roll(x_raw, hw - 1, axis=1).astype(jnp.float32)

    dh = x_down - x
    dw = x_right - x

    if nc % blk:
        # Ragged tail: rows past nc hold undefined data; select (don't
        # multiply) so inf/nan garbage cannot leak into the sums.
        row = jax.lax.broadcasted_iota(jnp.int32, (blk, 1), 0) + step * blk
        valid = row < nc
        dh = jnp.where(valid, dh, 0.0)
        dw = jnp.where(valid, dw, 0.0)

    d2h = dh * dh
    d2w = dw * dw

    # Masked reduction on the MXU: (blk, hw) x (hw,) -> (blk, 1) matvec with
    # a 0/1 mask row (kills wrap-around rows / columns), then a tiny
    # cross-sublane sum into the resident accumulators.
    h_mask = mask_ref[0:1, :]                             # (1, hw) f32
    w_mask = mask_ref[1:2, :]                             # (1, hw) f32
    nt = (((1,), (1,)), ((), ()))                         # contract lane dims
    h_col = jax.lax.dot_general(d2h, h_mask, nt,
                                precision=jax.lax.Precision.HIGHEST,
                                preferred_element_type=jnp.float32)
    w_col = jax.lax.dot_general(d2w, w_mask, nt,
                                precision=jax.lax.Precision.HIGHEST,
                                preferred_element_type=jnp.float32)

    h_ref[...] += jnp.sum(h_col, keepdims=True)
    w_ref[...] += jnp.sum(w_col, keepdims=True)


def tv_loss_pallas(x, tv_loss_weight=1.0, *,
                   target_block_bytes=2 * 1024 * 1024,
                   vmem_budget_bytes=20 * 1024 * 1024):
    """TV_Loss.forward(x): TVLoss_weight * tv_loss(x) / batch_size."""
    n, c, h, w = x.shape
    count_h = float(c * (h - 1) * w)   # _tensor_size(x[:, :, 1:, :])
    count_w = float(c * h * (w - 1))   # _tensor_size(x[:, :, :, 1:])

    nc = n * c
    hw = h * w
    x_flat = x.reshape(nc, hw)         # free reshape, lane-dense minor dim

    itemsize = x.dtype.itemsize
    plane_bytes = max(hw * itemsize, 1)
    nc8 = -(-nc // 8) * 8

    # Planes per grid step: multiple of 8 (sublane tiling), aim for
    # ~target_block_bytes of input per step (HBM-roofline DMA sizes,
    # amortizes the ~0.35 us per-step overhead), clamped by a conservative
    # VMEM budget: 2x double-buffered input block + ~6 f32 temps per plane.
    blk_target = max(8, (target_block_bytes // plane_bytes) // 8 * 8)
    per_plane_vmem = 2 * plane_bytes + 6 * hw * 4
    blk_budget = max(8, (vmem_budget_bytes // per_plane_vmem) // 8 * 8)
    # TODO(synk): tile the H*W axis (with a W-element halo for the "down"
    # neighbour) when even an 8-plane block exceeds the VMEM budget (huge H*W).
    blk = min(blk_target, blk_budget, nc8)
    grid = -(-nc // blk)

    # 0/1 masks over the flattened plane, stacked into one resident input:
    #  row 0: a "down" difference exists for flat index < (H-1)*W
    #  row 1: a "right" difference exists where idx % W != W-1
    idx = jnp.arange(hw, dtype=jnp.int32)
    h_mask = (idx < (h - 1) * w).astype(jnp.float32)
    w_mask = ((idx % w) != (w - 1)).astype(jnp.float32)
    masks = jnp.stack([h_mask, w_mask], axis=0)           # (2, hw)

    kernel = functools.partial(_tv_block_kernel, hw=hw, w=w, blk=blk, nc=nc)

    cost = pl.CostEstimate(
        flops=int(12 * grid * blk * hw),
        transcendentals=0,
        bytes_accessed=int(nc * hw * itemsize + 2 * hw * 4 + 2 * 4),
    )

    h_tv, w_tv = pl.pallas_call(
        kernel,
        out_shape=(
            jax.ShapeDtypeStruct((1, 1), jnp.float32),
            jax.ShapeDtypeStruct((1, 1), jnp.float32),
        ),
        grid=(grid,),
        in_specs=[
            pl.BlockSpec((blk, hw), lambda i: (i, 0)),    # blk planes per step
            pl.BlockSpec((2, hw), lambda i: (0, 0)),      # masks, resident
        ],
        out_specs=(
            pl.BlockSpec((1, 1), lambda i: (0, 0)),       # resident accumulators
            pl.BlockSpec((1, 1), lambda i: (0, 0)),
        ),
        compiler_params=pltpu.CompilerParams(
            dimension_semantics=("arbitrary",),           # carried accumulator
            vmem_limit_bytes=32 * 1024 * 1024,            # v5e default is 16 MiB
        ),
        cost_estimate=cost,
    )(x_flat, masks)

    return tv_loss_weight * 2.0 * (h_tv[0, 0] / count_h
                                   + w_tv[0, 0] / count_w) / n


def tv_loss_ref(x, tv_loss_weight=1.0):
    """Pure-JAX reference matching the PyTorch module."""
    n, c, h, w = x.shape
    count_h = c * (h - 1) * w
    count_w = c * h * (w - 1)
    h_tv = jnp.sum((x[:, :, 1:, :] - x[:, :, : h - 1, :]) ** 2)
    w_tv = jnp.sum((x[:, :, :, 1:] - x[:, :, :, : w - 1]) ** 2)
    return tv_loss_weight * 2.0 * (h_tv / count_h + w_tv / count_w) / n


if __name__ == "__main__":
    key = jax.random.PRNGKey(0)
    x = jax.random.normal(key, (2, 4, 16, 16), dtype=jnp.float32)

    out = tv_loss_pallas(x, tv_loss_weight=1.0)
    out = jax.block_until_ready(out)

    ref = tv_loss_ref(x, tv_loss_weight=1.0)
    assert jnp.allclose(out, ref, rtol=5e-4, atol=1e-5), (out, ref)

    print("KERNEL_OK")
</pallas_src>

<mosaic_0001>
module attributes {stable_mosaic.version = 11 : i64} {
  func.func @_tv_block_kernel(%arg0: i32, %arg1: memref<8x256xf32, #tpu.memory_space<vmem>>, %arg2: memref<2x256xf32, #tpu.memory_space<vmem>>, %arg3: memref<1x1xf32, #tpu.memory_space<vmem>>, %arg4: memref<1x1xf32, #tpu.memory_space<vmem>>) attributes {dimension_semantics = [#tpu.dimension_semantics<arbitrary>], iteration_bounds = array<i64: 1>, scalar_prefetch = 0 : i64, scratch_operands = 0 : i64, tpu.core_type = #tpu.core_type<tc>, window_params = [{transform_indices = @transform_0, window_bounds = array<i64: 8, 256>}, {pipeline_mode = #tpu.pipeline_mode<synchronous>, transform_indices = @transform_1, window_bounds = array<i64: 2, 256>}, {pipeline_mode = #tpu.pipeline_mode<synchronous>, transform_indices = @transform_2, window_bounds = array<i64: 1, 1>}, {pipeline_mode = #tpu.pipeline_mode<synchronous>, transform_indices = @transform_3, window_bounds = array<i64: 1, 1>}]} {
    %c0_i32 = arith.constant 0 : i32
    %0 = arith.cmpi eq, %arg0, %c0_i32 : i32
    %1 = arith.extui %0 : i1 to i32
    %c0_i32_0 = arith.constant 0 : i32
    %2 = arith.cmpi ne, %1, %c0_i32_0 : i32
    scf.if %2 {
      %cst_16 = arith.constant 0.000000e+00 : f32
      %30 = vector.broadcast %cst_16 : f32 to vector<1x1xf32>
      %c0_17 = arith.constant 0 : index
      %c0_18 = arith.constant 0 : index
      %31 = vector.load %arg3[%c0_17, %c0_18] : memref<1x1xf32, #tpu.memory_space<vmem>>, vector<1x1xf32>
      tpu.vector_store %arg3[%c0_17, %c0_18], %30 {strides = array<i32>} : memref<1x1xf32, #tpu.memory_space<vmem>>, vector<1x1xf32>,
      %cst_19 = arith.constant 0.000000e+00 : f32
      %32 = vector.broadcast %cst_19 : f32 to vector<1x1xf32>
      %c0_20 = arith.constant 0 : index
      %c0_21 = arith.constant 0 : index
      %33 = vector.load %arg4[%c0_20, %c0_21] : memref<1x1xf32, #tpu.memory_space<vmem>>, vector<1x1xf32>
      tpu.vector_store %arg4[%c0_20, %c0_21], %32 {strides = array<i32>} : memref<1x1xf32, #tpu.memory_space<vmem>>, vector<1x1xf32>,
    } else {
    }
    %c0 = arith.constant 0 : index
    %c0_1 = arith.constant 0 : index
    %3 = vector.load %arg1[%c0, %c0_1] : memref<8x256xf32, #tpu.memory_space<vmem>>, vector<8x256xf32>
    %c240_i32 = arith.constant 240 : i32
    %4 = tpu.dynamic_rotate %3 by %c240_i32 dim 1 : vector<8x256xf32>, i32 -> vector<8x256xf32>
    %c255_i32 = arith.constant 255 : i32
    %5 = tpu.dynamic_rotate %3 by %c255_i32 dim 1 : vector<8x256xf32>, i32 -> vector<8x256xf32>
    %6 = arith.subf %4, %3 : vector<8x256xf32>
    %7 = arith.subf %5, %3 : vector<8x256xf32>
    %8 = arith.mulf %6, %6 : vector<8x256xf32>
    %9 = arith.mulf %7, %7 : vector<8x256xf32>
    %c0_2 = arith.constant 0 : index
    %c0_3 = arith.constant 0 : index
    %10 = vector.load %arg2[%c0_2, %c0_3] : memref<2x256xf32, #tpu.memory_space<vmem>>, vector<1x256xf32>
    %c1 = arith.constant 1 : index
    %c0_4 = arith.constant 0 : index
    %11 = vector.load %arg2[%c1, %c0_4] : memref<2x256xf32, #tpu.memory_space<vmem>>, vector<1x256xf32>
    %cst = arith.constant dense<0.000000e+00> : vector<8x1xf32>
    %12 = tpu.matmul %8, %10, %cst {dimension_numbers = #tpu.dot_dimension_numbers<[1], [1], [0], [0], [0, 0, 1, 0], [], []>, precision = #tpu.contract_precision<fp32>} : vector<8x256xf32>, vector<1x256xf32>, vector<8x1xf32> -> vector<8x1xf32>
    %cst_5 = arith.constant dense<0.000000e+00> : vector<8x1xf32>
    %13 = tpu.matmul %9, %11, %cst_5 {dimension_numbers = #tpu.dot_dimension_numbers<[1], [1], [0], [0], [0, 0, 1, 0], [], []>, precision = #tpu.contract_precision<fp32>} : vector<8x256xf32>, vector<1x256xf32>, vector<8x1xf32> -> vector<8x1xf32>
    %c0_6 = arith.constant 0 : index
    %c0_7 = arith.constant 0 : index
    %14 = vector.load %arg3[%c0_6, %c0_7] : memref<1x1xf32, #tpu.memory_space<vmem>>, vector<1x1xf32>
    %15 = vector.shape_cast %12 : vector<8x1xf32> to vector<1x8x1xf32>
    %cst_8 = arith.constant dense<0.000000e+00> : vector<1xf32>
    %16 = vector.multi_reduction <add>, %15, %cst_8 [1, 2] : vector<1x8x1xf32> to vector<1xf32>
    %17 = vector.shape_cast %16 : vector<1xf32> to vector<1x1x1xf32>
    %18 = vector.extract %17[0, 0, 0] : f32 from vector<1x1x1xf32>
    %19 = vector.broadcast %18 : f32 to vector<1x1xf32>
    %20 = arith.addf %14, %19 : vector<1x1xf32>
    %c0_9 = arith.constant 0 : index
    %c0_10 = arith.constant 0 : index
    %21 = vector.load %arg3[%c0_9, %c0_10] : memref<1x1xf32, #tpu.memory_space<vmem>>, vector<1x1xf32>
    tpu.vector_store %arg3[%c0_9, %c0_10], %20 {strides = array<i32>} : memref<1x1xf32, #tpu.memory_space<vmem>>, vector<1x1xf32>,
    %c0_11 = arith.constant 0 : index
    %c0_12 = arith.constant 0 : index
    %22 = vector.load %arg4[%c0_11, %c0_12] : memref<1x1xf32, #tpu.memory_space<vmem>>, vector<1x1xf32>
    %23 = vector.shape_cast %13 : vector<8x1xf32> to vector<1x8x1xf32>
    %cst_13 = arith.constant dense<0.000000e+00> : vector<1xf32>
    %24 = vector.multi_reduction <add>, %23, %cst_13 [1, 2] : vector<1x8x1xf32> to vector<1xf32>
    %25 = vector.shape_cast %24 : vector<1xf32> to vector<1x1x1xf32>
    %26 = vector.extract %25[0, 0, 0] : f32 from vector<1x1x1xf32>
    %27 = vector.broadcast %26 : f32 to vector<1x1xf32>
    %28 = arith.addf %22, %27 : vector<1x1xf32>
    %c0_14 = arith.constant 0 : index
    %c0_15 = arith.constant 0 : index
    %29 = vector.load %arg4[%c0_14, %c0_15] : memref<1x1xf32, #tpu.memory_space<vmem>>, vector<1x1xf32>
    tpu.vector_store %arg4[%c0_14, %c0_15], %28 {strides = array<i32>} : memref<1x1xf32, #tpu.memory_space<vmem>>, vector<1x1xf32>,
    return
  }
  func.func @transform_0(%arg0: i32) -> (i32, i32) {
    %c0_i32 = arith.constant 0 : i32
    %c0_i32_0 = arith.constant 0 : i32
    return %arg0, %c0_i32 : i32, i32
  }
  func.func @transform_1(%arg0: i32) -> (i32, i32) {
    %c0_i32 = arith.constant 0 : i32
    %c0_i32_0 = arith.constant 0 : i32
    %c0_i32_1 = arith.constant 0 : i32
    return %c0_i32, %c0_i32_0 : i32, i32
  }
  func.func @transform_2(%arg0: i32) -> (i32, i32) {
    %c0_i32 = arith.constant 0 : i32
    %c0_i32_0 = arith.constant 0 : i32
    %c0_i32_1 = arith.constant 0 : i32
    return %c0_i32, %c0_i32_0 : i32, i32
  }
  func.func @transform_3(%arg0: i32) -> (i32, i32) {
    %c0_i32 = arith.constant 0 : i32
    %c0_i32_0 = arith.constant 0 : i32
    %c0_i32_1 = arith.constant 0 : i32
    return %c0_i32, %c0_i32_0 : i32, i32
  }
}

</mosaic_0001>

<bundles_post_ra>
// kernel: tpu_custom_call.1
= control target key start
LH: loop header
LB: loop body
LE: loop exit
PB: predicated region body
PF: predicated region fallthrough
CT: control target
= control target key end

     0   :  { %9 = vsyncpa [#allocation3], 0  ;;  %s353_s0 = inlined_call_operand.hbm [shape: f32[8,256], index: 0, kind: input, shape index: {}]   ;;  %s354_s1 = inlined_call_operand.hbm [shape: f32[2,256], index: 1, kind: input, shape index: {}]   ;;  %s355_s2 = inlined_call_operand.hbm [shape: f32[1,1], index: 2, kind: output, shape index: {0}]   ;;  %s356_s3 = inlined_call_operand.hbm [shape: f32[1,1], index: 3, kind: output, shape index: {1}]  }
   0x1   :  { %10 = vsyncpa [#allocation6], 0 }
   0x2   :  { %11 = vsyncpa [#allocation4], 0 }
   0x3   :  { %12 = vsyncpa [#allocation9], 0  ;;  %s274_s12 = smov [#allocation2]   ;;  %s275_s14 = smov [#allocation5]  }
   0x4   :  { %s19_s13 = sshll.u32 %s274_s12, 4  ;;  %s29_s15 = sshll.u32 %s275_s14, 4  ;;  %s20_s13 = int_to_ptr.vmem [resolvable:$true] %s19_s13  ;;  %s30_s15 = int_to_ptr.vmem [resolvable:$true] %s29_s15 }
   0x5   :  { %s178_s18 = scalar_lea.hbm %s353_s0, 256 }
   0x6   :  { %p179_p0 = scmp.ne.s32.totalorder %s353_s0, %s178_s18  ;;  %p182_p1 = scmp.lt.u32.totalorder %s178_s18, %s353_s0 }
   0x8   :  { %p184_p2 = pnand %p182_p1, %p179_p0 }
   0xa   :  { %187 = shalt.err (!%p184_p2)
}
   0xb   :  { %s188_s23 = scalar_lea.vmem %s20_s13, 256  ;;  %p193_p4 = scmp.lt.s32.totalorder %s20_s13, %s20_s13 }
   0xc   :  { %p189_p3 = scmp.ne.s32.totalorder %s20_s13, %s188_s23  ;;  %p194_p5 = scmp.lt.s32.totalorder %s188_s23, %s188_s23 }
   0xe   :  { %p195_p6 = por %p194_p5, %p193_p4 }
  0x10   :  { %p196_p7 = pnand %p195_p6, %p189_p3 }
  0x12   :  { %199 = shalt.err (!%p196_p7)
}
  0x13   :  { %22 = dma.hbm_to_vmem [thread:$0]  %s353_s0, 256, %s20_s13, [#allocation3]  }
  0x14   :  { %s200_s28 = scalar_lea.hbm %s354_s1, 64 }
  0x15   :  { %p201_p8 = scmp.ne.s32.totalorder %s354_s1, %s200_s28  ;;  %p204_p9 = scmp.lt.u32.totalorder %s200_s28, %s354_s1 }
  0x17   :  { %p206_p10 = pnand %p204_p9, %p201_p8 }
  0x19   :  { %209 = shalt.err (!%p206_p10)
}
  0x1a   :  { %s210_s6 = scalar_lea.vmem %s30_s15, 64  ;;  %p215_p12 = scmp.lt.s32.totalorder %s30_s15, %s30_s15 }
  0x1b   :  { %p211_p11 = scmp.ne.s32.totalorder %s30_s15, %s210_s6  ;;  %p216_p13 = scmp.lt.s32.totalorder %s210_s6, %s210_s6 }
  0x1d   :  { %p217_p0 = por %p216_p13, %p215_p12 }
  0x1f   :  { %p218_p1 = pnand %p217_p0, %p211_p11 }
  0x21   :  { %221 = shalt.err (!%p218_p1)
}
  0x22   :  { %32 = dma.hbm_to_vmem [thread:$0]  %s354_s1, 64, %s30_s15, [#allocation6]  }
  0x23   :  { %266 = dma.done.wait [#allocation3], 256  }
  0x24   :  { %267 = vsyncadd [#allocation3], 4294967040 }
  0x25   :  { %268 = dma.done.wait [#allocation6], 64  }
  0x26   :  { %269 = vsyncadd [#allocation6], 4294967232  ;;  %v46_v0 = vld [vmem:[#allocation2] sm:$0xff]  ;;  %s276_s8 = smov 127   ;;  %s277_s9 = smov 112   ;;  %v47_v1 = vld [vmem:[#allocation2 + $0x8] sm:$0xff]  ;;  %v52_v2 = vlaneseq }
  0x27   :  { %57 = vrot.lane.b32.xlu1 %v46_v0, %s276_s8  ;;  %48 = vrot.lane.b32.xlu0 %v46_v0, %s277_s9  ;;  %v74_v9 = vld [vmem:[#allocation5 + $0x1] ss:$2 sm:$0x3]  ;;  %v72_v10 = vld [vmem:[#allocation5] ss:$2 sm:$0x3] }
  0x28   :  { %v77_v3 = vshrl.u32 %v52_v2, 7  ;;  %v53_v4 = vand.u32 127, %v52_v2  ;;  %vm108_vm2 = vcmask 7168   ;;  %vm43_vm3 = vcmask 0   ;;  %s279_s1 = smov [#allocation7]   ;;  %s280_s12 = smov [#allocation8]  }
  0x29   :  { %v278_v39 = vmov 0.0   ;;  %s143_s10 = sshll.u32 %s279_s1, 4  ;;  %s153_s13 = sshll.u32 %s280_s12, 4  ;;  %s144_s10 = int_to_ptr.vmem [resolvable:$true] %s143_s10  ;;  %s154_s13 = int_to_ptr.vmem [resolvable:$true] %s153_s13 }
  0x2a   :  { %v78_v7 = vsub.s32 0, %v77_v3  ;;  %v82_v8 = vsub.s32 1, %v77_v3  ;;  %vm61_vm0 = vcmp.lt.s32.totalorder %v53_v4, 127  ;;  %vm54_vm1 = vcmp.lt.s32.totalorder %v53_v4, 112  ;;  %44 = vst.msk [vmem:[#allocation7] sm:$0x1] %vm43_vm3, %v278_v39  ;;  %p227_p3 = scmp.lt.s32.totalorder %s144_s10, %s144_s10 }
  0x2b   :  { %59 = vrot.lane.b32.xlu1 %v47_v1, %s276_s8  ;;  %50 = vrot.lane.b32.xlu0 %v47_v1, %s277_s9  ;;  %45 = vst.msk [vmem:[#allocation8] sm:$0x1] %vm43_vm3, %v278_v39  ;;  %s222_s15 = scalar_lea.vmem %s144_s10, 16  ;;  %s226_s16 = scalar_lea.vmem %s144_s10, 32 }
  0x2c   :  { %v95_v13 = vrot.slane %v74_v9, %v78_v7  ;;  %v99_v14 = vrot.slane %v74_v9, %v82_v8  ;;  %v79_v15 = vrot.slane %v72_v10, %v78_v7  ;;  %v83_v16 = vrot.slane %v72_v10, %v82_v8  ;;  %p223_p2 = scmp.ne.s32.totalorder %s144_s10, %s222_s15  ;;  %p228_p4 = scmp.lt.s32.totalorder %s226_s16, %s222_s15 }
  0x2e   :  { %p229_p5 = por %p228_p4, %p227_p3 }
  0x30   :  { %p230_p6 = pnand %p229_p5, %p223_p2 }
  0x31   :  { %v107_v54 = vld [vmem:[#allocation7] sm:$0x1] }
  0x32   :  { %v123_v57 = vld [vmem:[#allocation8] sm:$0x1] }
  0x99   :  { %v58_v5 = vpop.permute.xlu1 %57  ;;  %v49_v6 = vpop.permute.xlu0 %48 }
  0x9d   :  { %v60_v11 = vpop.permute.xlu1 %59  ;;  %v51_v12 = vpop.permute.xlu0 %50 }
  0x9e   :  { %v62_v17 = vsel %vm61_vm0, %v58_v5, %v60_v11  ;;  %v63_v18 = vsel %vm61_vm0, %v60_v11, %v58_v5  ;;  %v55_v19 = vsel %vm54_vm1, %v49_v6, %v51_v12  ;;  %v56_v20 = vsel %vm54_vm1, %v51_v12, %v49_v6 }
  0x9f   :  { %v66_v21 = vsub.f32 %v62_v17, %v46_v0  ;;  %v67_v22 = vsub.f32 %v63_v18, %v47_v1  ;;  %v64_v23 = vsub.f32 %v55_v19, %v46_v0  ;;  %v65_v24 = vsub.f32 %v56_v20, %v47_v1 }
  0xa1   :  { %v70_v25 = vmul.f32 %v66_v21, %v66_v21  ;;  %v71_v26 = vmul.f32 %v67_v22, %v67_v22  ;;  %v68_v27 = vmul.f32 %v64_v23, %v64_v23  ;;  %v69_v28 = vmul.f32 %v65_v24, %v65_v24 }
  0xa3   :  { %v102_v29 = vmul.f32 %v95_v13, %v70_v25  ;;  %v103_v30 = vmul.f32 %v99_v14, %v71_v26  ;;  %v86_v31 = vmul.f32 %v79_v15, %v68_v27  ;;  %v87_v32 = vmul.f32 %v83_v16, %v69_v28 }
  0xa5   :  { %v104_v33 = vadd.f32 %v103_v30, %v102_v29  ;;  %v88_v34 = vadd.f32 %v87_v32, %v86_v31 }
  0xa7   :  { %105 = vadd.xlane.f32.xlu1 %v104_v33  ;;  %89 = vadd.xlane.f32.xlu0 %v88_v34 }
 0x134   :  { %v90_v35 = vpop.xlane.xlu0 %89  ;;  %v106_v37 = vpop.xlane.xlu1 %105 }
 0x135   :  { %v109_v36 = vsel %vm108_vm2, %v90_v35, 0.0  ;;  %v124_v38 = vsel %vm108_vm2, %v106_v37, 0.0 }
 0x136   :  { %110 = vadd.xlane.f32.xlu0 %v109_v36 }
 0x13a   :  { %125 = vadd.xlane.f32.xlu0 %v124_v38 }
 0x1c3   :  { %v111_v40 = vpop.xlane.xlu0 %110 }
 0x1c4   :  { %v112_v41 = vrot.slane %v111_v40, 4 }
 0x1c6   :  { %v113_v42 = vadd.f32 %v112_v41, %v111_v40 }
 0x1c7   :  { %v126_v43 = vpop.xlane.xlu0 %125 }
 0x1c8   :  { %v114_v44 = vrot.slane %v113_v42, 2  ;;  %v127_v45 = vrot.slane %v126_v43, 4 }
 0x1ca   :  { %v128_v46 = vadd.f32 %v127_v45, %v126_v43  ;;  %v115_v47 = vadd.f32 %v114_v44, %v113_v42 }
 0x1cc   :  { %v129_v48 = vrot.slane %v128_v46, 2  ;;  %v116_v49 = vrot.slane %v115_v47, 1 }
 0x1ce   :  { %v130_v50 = vadd.f32 %v129_v48, %v128_v46  ;;  %v117_v51 = vadd.f32 %v116_v49, %v115_v47 }
 0x1d0   :  { %167 = vpush %v117_v51  ;;  %v131_v52 = vrot.slane %v130_v50, 1 }
 0x1d2   :  { %v132_v53 = vadd.f32 %v131_v52, %v130_v50 }
 0x1d4   :  { %169 = vpush %v132_v53 }
 0x201   :  { %s168_s11 = spop %167 }
 0x202   :  { %v119_v55 = vstv %s168_s11 }
 0x203   :  { %v120_v56 = vadd.f32 %v119_v55, %v107_v54 }
 0x205   :  { %122 = vst.msk [vmem:[#allocation7] sm:$0x1] %vm43_vm3, %v120_v56  ;;  %s170_s14 = spop %169 }
 0x206   :  { %v134_v58 = vstv %s170_s14 }
 0x207   :  { %233 = shalt.err (!%p230_p6)
}
 0x208   :  { %s234_s19 = scalar_lea.hbm %s355_s2, 16 }
 0x209   :  { %p235_p7 = scmp.ne.s32.totalorder %s355_s2, %s234_s19  ;;  %p238_p8 = scmp.lt.u32.totalorder %s234_s19, %s355_s2 }
 0x20b   :  { %p240_p9 = pnand %p238_p8, %p235_p7 }
 0x20d   :  { %243 = shalt.err (!%p240_p9)
}
 0x20e   :  { %146 = dma.vmem_to_hbm [thread:$0]  %s144_s10, 16, %s355_s2, [#allocation4]   ;;  %v135_v59 = vadd.f32 %v134_v58, %v123_v57 }
 0x20f   :  { %s244_s26 = scalar_lea.vmem %s154_s13, 16  ;;  %s248_s27 = scalar_lea.vmem %s154_s13, 32 }
 0x210   :  { %136 = vst.msk [vmem:[#allocation8] sm:$0x1] %vm43_vm3, %v135_v59  ;;  %p245_p10 = scmp.ne.s32.totalorder %s154_s13, %s244_s26  ;;  %p249_p11 = scmp.lt.s32.totalorder %s154_s13, %s154_s13 }
 0x211   :  { %p250_p12 = scmp.lt.s32.totalorder %s248_s27, %s244_s26 }
 0x213   :  { %p251_p13 = por %p250_p12, %p249_p11 }
 0x215   :  { %p252_p0 = pnand %p251_p13, %p245_p10 }
 0x217   :  { %255 = shalt.err (!%p252_p0)
}
 0x218   :  { %s256_s30 = scalar_lea.hbm %s356_s3, 16 }
 0x219   :  { %p257_p1 = scmp.ne.s32.totalorder %s356_s3, %s256_s30  ;;  %p260_p2 = scmp.lt.u32.totalorder %s256_s30, %s356_s3 }
 0x21b   :  { %p262_p3 = pnand %p260_p2, %p257_p1 }
 0x21d   :  { %265 = shalt.err (!%p262_p3)
}
 0x21e   :  { %156 = dma.vmem_to_hbm [thread:$0]  %s154_s13, 16, %s356_s3, [#allocation9]  }
 0x21f   :  { %270 = dma.done.wait [#allocation4], 16  }
 0x220   :  { %271 = vsyncadd [#allocation4], 4294967280 }
 0x221   :  { %272 = dma.done.wait [#allocation9], 16  }
 0x222   :  { %273 = vsyncadd [#allocation9], 4294967280 }
 0x223   :  { %163 = vsyncpa [#allocation3], 1 }
 0x224   :  { %164 = vsyncpa [#allocation6], 1 }
 0x225   :  { %165 = vsyncpa [#allocation4], 1 }
 0x226   :  { %166 = vsyncpa [#allocation9], 1 }

</bundles_post_ra>
